<compile_context>
chip_gen: v7x
topology: tpu7x:2x2x1
jax: 0.10.0
libtpu: 0.0.40
codegen_flags: <defaults>
</compile_context>

<pallas_src>
import functools

import jax
import jax.numpy as jnp
import numpy as np
from jax.experimental import pallas as pl
from jax.experimental.pallas import tpu as pltpu

_BF16 = jnp.bfloat16
_F32 = jnp.float32


def _round_up(x, m):
    return (x + m - 1) // m * m


def _vmem_limit(bytes_needed, extra=8 << 20):
    return int(min(100 << 20, max(32 << 20, int(bytes_needed) + extra)))


def _nbytes(arrs):
    return sum(int(np.prod(a.shape)) * a.dtype.itemsize for a in arrs)


def _layer_norm(v, w, b, eps=1e-5):
    mu = jnp.mean(v, axis=-1, keepdims=True)
    var = jnp.mean(jnp.square(v - mu), axis=-1, keepdims=True)
    return (v - mu) * jax.lax.rsqrt(var + eps) * w + b


# --------------------------------------------------------------------------
# Kernel A: LN1 + fused K|V projection for one batch element (once per layer).
# --------------------------------------------------------------------------
def _kv_proj_kernel(x_ref, ln1w_ref, ln1b_ref, wkv_ref, bkv_ref, kv_ref):
    x = x_ref[...].astype(_F32)                                    # (L, D)
    h = _layer_norm(x, ln1w_ref[...], ln1b_ref[...])
    kv = jnp.dot(h.astype(_BF16), wkv_ref[...],
                 preferred_element_type=_F32) + bkv_ref[...]       # (L, 2D)
    kv_ref[...] = kv.astype(kv_ref.dtype)


# --------------------------------------------------------------------------
# Kernel B: attention (using precomputed K|V) + MLP for one (batch, row-tile).
# --------------------------------------------------------------------------
def _block_kernel(x_ref, kv_ref, ln1w, ln1b, wq, bq, wo, bo,
                  ln2w, ln2b, w1, b1, w2, b2, out_ref,
                  *, n_head, mlp_chunk):
    xq = x_ref[...].astype(_F32)                                   # (TL, D)
    TL, D = xq.shape
    dh = D // n_head

    # ---------------- attention branch (pre-LN) ----------------
    hq = _layer_norm(xq, ln1w[...], ln1b[...])
    # 1/sqrt(dh) is pre-folded into wq/bq on the host.
    q = jnp.dot(hq.astype(_BF16), wq[...],
                preferred_element_type=_F32) + bq[...]             # (TL, D) f32
    q = q.astype(_BF16)

    kv = kv_ref[...]                                               # (L, 2D) bf16
    k = kv[:, :D]
    v = kv[:, D:]

    # TODO(synk): attn_mask is None in this configuration; additive/causal
    # masks and an online-softmax (flash) path for very long L are not
    # implemented.
    heads = []
    for h in range(n_head):                        # static unroll over heads
        lo, hi = h * dh, (h + 1) * dh
        # q . k^T without materializing a transpose: contract axis 1 vs axis 1.
        s = jax.lax.dot_general(q[:, lo:hi], k[:, lo:hi],
                                dimension_numbers=(((1,), (1,)), ((), ())),
                                preferred_element_type=_F32)       # (TL, L) f32
        s = s - jnp.max(s, axis=-1, keepdims=True)
        e = jnp.exp(s)
        inv = pl.reciprocal(jnp.sum(e, axis=-1, keepdims=True), approx=True)
        p = (e * inv).astype(_BF16)
        heads.append(jnp.dot(p, v[:, lo:hi], preferred_element_type=_F32))
    # Single full-K output projection (avoids n_head small-K=dh matmuls that
    # underfill the 256-wide MXU on v6e/v7x).
    o = jnp.concatenate(heads, axis=-1)                            # (TL, D) f32
    att = jnp.dot(o.astype(_BF16), wo[...],
                  preferred_element_type=_F32) + bo[...]
    x = xq + att

    # ---------------- MLP branch (pre-LN), hidden dim chunked ----------------
    h2 = _layer_norm(x, ln2w[...], ln2b[...]).astype(_BF16)
    D4 = w1.shape[1]
    acc = jnp.zeros((TL, D), _F32)
    for c0 in range(0, D4, mlp_chunk):             # static unroll over chunks
        c1 = min(c0 + mlp_chunk, D4)
        m = jnp.dot(h2, w1[:, c0:c1], preferred_element_type=_F32) + b1[:, c0:c1]
        # exact GELU (PyTorch nn.GELU default, approximate='none'), f32
        m = 0.5 * m * (1.0 + jax.lax.erf(m * (2.0 ** -0.5)))
        acc = acc + jnp.dot(m.astype(_BF16), w2[c0:c1, :],
                            preferred_element_type=_F32)
    out_ref[...] = (x + acc + b2[...]).astype(out_ref.dtype)


# --------------------------------------------------------------------------
# Host wrappers.
# --------------------------------------------------------------------------
def residual_block(x_nld, p, n_head, *, tile_l=128, mlp_chunk=1024):
    """x_nld: (N, L, D) batch-major.  One KV-projection call + one main call."""
    N, L, D = x_nld.shape
    if D % n_head != 0:
        raise ValueError(f"d_model={D} must be divisible by n_head={n_head}")
    dh = D // n_head

    # Host-side weight prep: fold the 1/sqrt(dh) attention scale into the Q
    # projection, fuse K|V into one (D, 2D) matmul, cast matmul weights to
    # bf16 (halves weight HBM + VMEM; MXU is natively bf16).  LN params and
    # biases stay f32.
    scale = jnp.float32(1.0 / float(dh) ** 0.5)
    wq = (p["wq"] * scale).astype(_BF16)
    bq = (p["bq"] * scale).astype(_F32)
    wkv = jnp.concatenate([p["wk"], p["wv"]], axis=1).astype(_BF16)   # (D, 2D)
    bkv = jnp.concatenate([p["bk"], p["bv"]], axis=1).astype(_F32)    # (1, 2D)
    wo = p["wo"].astype(_BF16)
    w1 = p["w1"].astype(_BF16)
    w2 = p["w2"].astype(_BF16)

    # Grid-invariant weights: whole-array, single-buffered, VMEM-resident.
    w_vmem = pl.BlockSpec(memory_space=pltpu.MemorySpace.VMEM)

    # ---- Kernel A: K|V projection, once per layer per batch element ----
    kv_weights = [p["ln1_w"], p["ln1_b"], wkv, bkv]
    kv_bytes = _nbytes(kv_weights) + 2 * (L * D * 4 + L * 2 * D * 2)
    kv = pl.pallas_call(
        _kv_proj_kernel,
        out_shape=jax.ShapeDtypeStruct((N, L, 2 * D), _BF16),
        grid=(N,),
        in_specs=[pl.BlockSpec((pl.Squeezed(), L, D), lambda n: (n, 0, 0))]
                 + [w_vmem] * len(kv_weights),
        out_specs=pl.BlockSpec((pl.Squeezed(), L, 2 * D), lambda n: (n, 0, 0)),
        compiler_params=pltpu.CompilerParams(
            dimension_semantics=("parallel",),
            vmem_limit_bytes=_vmem_limit(kv_bytes)),
    )(x_nld, *kv_weights)

    # ---- Pad query rows only (keys stay at true L: no softmax mask needed),
    # so the second "parallel" grid axis exists at real CLIP lengths. ----
    tl = min(tile_l, _round_up(L, 8))
    Lq = _round_up(L, tl)
    x_q = x_nld if Lq == L else jnp.pad(x_nld, ((0, 0), (0, Lq - L), (0, 0)))
    num_lt = Lq // tl

    # ---- Kernel B: attention + MLP over (batch, query-row-tile) grid ----
    blk_weights = [p["ln1_w"], p["ln1_b"], wq, bq, wo, p["bo"],
                   p["ln2_w"], p["ln2_b"], w1, p["b1"], w2, p["b2"]]
    blk_bytes = (_nbytes(blk_weights)
                 + 2 * (L * 2 * D * 2)        # double-buffered KV block
                 + 4 * (tl * D * 4)           # x/out tiles
                 + 2 * (tl * L * 4)           # score tile headroom
                 + tl * min(4 * D, mlp_chunk) * 4)
    out = pl.pallas_call(
        functools.partial(_block_kernel, n_head=n_head, mlp_chunk=mlp_chunk),
        out_shape=jax.ShapeDtypeStruct((N, Lq, D), x_nld.dtype),
        grid=(N, num_lt),
        in_specs=[pl.BlockSpec((pl.Squeezed(), tl, D), lambda n, lt: (n, lt, 0)),
                  pl.BlockSpec((pl.Squeezed(), L, 2 * D), lambda n, lt: (n, 0, 0))]
                 + [w_vmem] * len(blk_weights),
        out_specs=pl.BlockSpec((pl.Squeezed(), tl, D), lambda n, lt: (n, lt, 0)),
        compiler_params=pltpu.CompilerParams(
            dimension_semantics=("parallel", "parallel"),
            vmem_limit_bytes=_vmem_limit(blk_bytes)),
    )(x_q, kv, *blk_weights)

    return out[:, :L, :] if Lq != L else out


@functools.partial(jax.jit, static_argnums=(2,))
def transformer_forward(x_lnd, layer_params, n_head):
    """Public API: x_lnd is (L, N, D), matching the PyTorch module."""
    x = jnp.transpose(x_lnd, (1, 0, 2))          # -> (N, L, D), once for the stack
    for p in layer_params:
        x = residual_block(x, p, n_head)
    return jnp.transpose(x, (1, 0, 2))           # -> (L, N, D)


def init_params(key, width, layers):
    """Deterministic synthetic parameters.  Linear weights are stored
    pre-transposed as (in, out) so the kernel computes y = x @ W + b."""
    d4 = 4 * width
    params = []
    for l in range(layers):
        ks = jax.random.split(jax.random.fold_in(key, l), 12)

        def nrm(k, shape, scale=0.02):
            return scale * jax.random.normal(k, shape, dtype=jnp.float32)

        params.append(dict(
            ln1_w=jnp.ones((1, width), jnp.float32),
            ln1_b=jnp.zeros((1, width), jnp.float32),
            wq=nrm(ks[0], (width, width)),
            wk=nrm(ks[1], (width, width)),
            wv=nrm(ks[2], (width, width)),
            bq=nrm(ks[3], (1, width), 0.01),
            bk=nrm(ks[4], (1, width), 0.01),
            bv=nrm(ks[5], (1, width), 0.01),
            wo=nrm(ks[6], (width, width)),
            bo=nrm(ks[7], (1, width), 0.01),
            ln2_w=jnp.ones((1, width), jnp.float32),
            ln2_b=jnp.zeros((1, width), jnp.float32),
            w1=nrm(ks[8], (width, d4)),
            b1=nrm(ks[9], (1, d4), 0.01),
            w2=nrm(ks[10], (d4, width)),
            b2=nrm(ks[11], (1, width), 0.01),
        ))
    return params


def reference_forward(x_lnd, layer_params, n_head):
    """Pure-JAX f32 reference reproducing the PyTorch forward pass."""
    x = x_lnd.astype(jnp.float32)
    L, N, D = x.shape
    dh = D // n_head
    scale = 1.0 / dh ** 0.5

    def ln(v, w, b):
        mu = v.mean(-1, keepdims=True)
        var = ((v - mu) ** 2).mean(-1, keepdims=True)
        return (v - mu) / jnp.sqrt(var + 1e-5) * w.reshape(-1) + b.reshape(-1)

    for p in layer_params:
        h = ln(x, p["ln1_w"], p["ln1_b"])
        q = (h @ p["wq"] + p["bq"].reshape(-1)).reshape(L, N, n_head, dh)
        k = (h @ p["wk"] + p["bk"].reshape(-1)).reshape(L, N, n_head, dh)
        v = (h @ p["wv"] + p["bv"].reshape(-1)).reshape(L, N, n_head, dh)
        s = jnp.einsum("lnhd,mnhd->nhlm", q * scale, k)
        a = jax.nn.softmax(s, axis=-1)
        o = jnp.einsum("nhlm,mnhd->lnhd", a, v).reshape(L, N, D)
        o = o @ p["wo"] + p["bo"].reshape(-1)
        x = x + o
        h = ln(x, p["ln2_w"], p["ln2_b"])
        m = h @ p["w1"] + p["b1"].reshape(-1)
        m = jax.nn.gelu(m, approximate=False)
        m = m @ p["w2"] + p["b2"].reshape(-1)
        x = x + m
    return x


if __name__ == "__main__":
    width, layers, heads = 32, 2, 4           # Transformer(width=32, layers=2, heads=4)
    seq_len, batch = 8, 2

    key = jax.random.PRNGKey(0)
    kx, kp = jax.random.split(key)
    x = jax.random.normal(kx, (seq_len, batch, width), dtype=jnp.float32)
    layer_params = init_params(kp, width, layers)

    out = transformer_forward(x, layer_params, heads)
    out = jax.block_until_ready(out)

    ref = reference_forward(x, layer_params, heads)
    # bf16 MXU operands with f32 accumulation + approx reciprocal in softmax
    # -> looser tolerance than the pure-f32 path.
    np.testing.assert_allclose(np.asarray(out), np.asarray(ref),
                               rtol=3e-2, atol=3e-2)
    print("KERNEL_OK")
</pallas_src>

<mosaic_0001>
module attributes {stable_mosaic.version = 11 : i64} {
  func.func @_kv_proj_kernel(%arg0: i32, %arg1: memref<1x8x32xf32, #tpu.memory_space<vmem>>, %arg2: memref<1x32xf32, #tpu.memory_space<vmem>>, %arg3: memref<1x32xf32, #tpu.memory_space<vmem>>, %arg4: memref<32x64xbf16, #tpu.memory_space<vmem>>, %arg5: memref<1x64xf32, #tpu.memory_space<vmem>>, %arg6: memref<1x8x64xbf16, #tpu.memory_space<vmem>>) attributes {dimension_semantics = [#tpu.dimension_semantics<parallel>], iteration_bounds = array<i64: 2>, scalar_prefetch = 0 : i64, scratch_operands = 0 : i64, tpu.core_type = #tpu.core_type<tc>, window_params = [{transform_indices = @transform_0, window_bounds = array<i64: 1, 8, 32>}, {pipeline_mode = #tpu.pipeline_mode<synchronous>, transform_indices = @transform_1, window_bounds = array<i64: 1, 32>}, {pipeline_mode = #tpu.pipeline_mode<synchronous>, transform_indices = @transform_2, window_bounds = array<i64: 1, 32>}, {pipeline_mode = #tpu.pipeline_mode<synchronous>, transform_indices = @transform_3, window_bounds = array<i64: 32, 64>}, {pipeline_mode = #tpu.pipeline_mode<synchronous>, transform_indices = @transform_4, window_bounds = array<i64: 1, 64>}, {transform_indices = @transform_5, window_bounds = array<i64: 1, 8, 64>}]} {
    %c0 = arith.constant 0 : index
    %c0_0 = arith.constant 0 : index
    %c0_1 = arith.constant 0 : index
    %0 = vector.load %arg1[%c0, %c0_0, %c0_1] : memref<1x8x32xf32, #tpu.memory_space<vmem>>, vector<1x8x32xf32>
    %1 = vector.shape_cast %0 : vector<1x8x32xf32> to vector<8x32xf32>
    %c0_2 = arith.constant 0 : index
    %c0_3 = arith.constant 0 : index
    %2 = vector.load %arg2[%c0_2, %c0_3] : memref<1x32xf32, #tpu.memory_space<vmem>>, vector<1x32xf32>
    %c0_4 = arith.constant 0 : index
    %c0_5 = arith.constant 0 : index
    %3 = vector.load %arg3[%c0_4, %c0_5] : memref<1x32xf32, #tpu.memory_space<vmem>>, vector<1x32xf32>
    %cst = arith.constant dense<0.000000e+00> : vector<8xf32>
    %4 = vector.multi_reduction <add>, %1, %cst [1] : vector<8x32xf32> to vector<8xf32>
    %5 = vector.shape_cast %4 : vector<8xf32> to vector<8x1xf32>
    %cst_6 = arith.constant 3.200000e+01 : f32
    %6 = vector.broadcast %cst_6 : f32 to vector<8x1xf32>
    %7 = arith.divf %5, %6 : vector<8x1xf32>
    %8 = vector.broadcast %7 : vector<8x1xf32> to vector<8x32xf32>
    %9 = arith.subf %1, %8 : vector<8x32xf32>
    %10 = arith.mulf %9, %9 : vector<8x32xf32>
    %cst_7 = arith.constant dense<0.000000e+00> : vector<8xf32>
    %11 = vector.multi_reduction <add>, %10, %cst_7 [1] : vector<8x32xf32> to vector<8xf32>
    %12 = vector.shape_cast %11 : vector<8xf32> to vector<8x1xf32>
    %cst_8 = arith.constant 3.200000e+01 : f32
    %13 = vector.broadcast %cst_8 : f32 to vector<8x1xf32>
    %14 = arith.divf %12, %13 : vector<8x1xf32>
    %15 = vector.broadcast %7 : vector<8x1xf32> to vector<8x32xf32>
    %16 = arith.subf %1, %15 : vector<8x32xf32>
    %cst_9 = arith.constant 9.99999974E-6 : f32
    %17 = vector.broadcast %cst_9 : f32 to vector<8x1xf32>
    %18 = arith.addf %14, %17 : vector<8x1xf32>
    %19 = math.rsqrt %18 : vector<8x1xf32>
    %20 = vector.broadcast %19 : vector<8x1xf32> to vector<8x32xf32>
    %21 = arith.mulf %16, %20 : vector<8x32xf32>
    %22 = vector.broadcast %2 : vector<1x32xf32> to vector<8x32xf32>
    %23 = arith.mulf %21, %22 : vector<8x32xf32>
    %24 = vector.broadcast %3 : vector<1x32xf32> to vector<8x32xf32>
    %25 = arith.addf %23, %24 : vector<8x32xf32>
    %26 = arith.truncf %25 : vector<8x32xf32> to vector<8x32xbf16>
    %c0_10 = arith.constant 0 : index
    %c0_11 = arith.constant 0 : index
    %27 = vector.load %arg4[%c0_10, %c0_11] : memref<32x64xbf16, #tpu.memory_space<vmem>>, vector<32x64xbf16>
    %cst_12 = arith.constant dense<0.000000e+00> : vector<8x64xf32>
    %28 = tpu.matmul %26, %27, %cst_12 {dimension_numbers = #tpu.dot_dimension_numbers<[1], [0], [0], [1], [0, 0, 1, 1], [], []>} : vector<8x32xbf16>, vector<32x64xbf16>, vector<8x64xf32> -> vector<8x64xf32>
    %c0_13 = arith.constant 0 : index
    %c0_14 = arith.constant 0 : index
    %29 = vector.load %arg5[%c0_13, %c0_14] : memref<1x64xf32, #tpu.memory_space<vmem>>, vector<1x64xf32>
    %30 = vector.broadcast %29 : vector<1x64xf32> to vector<8x64xf32>
    %31 = arith.addf %28, %30 : vector<8x64xf32>
    %32 = arith.truncf %31 : vector<8x64xf32> to vector<8x64xbf16>
    %c0_15 = arith.constant 0 : index
    %c0_16 = arith.constant 0 : index
    %c0_17 = arith.constant 0 : index
    %33 = vector.load %arg6[%c0_15, %c0_16, %c0_17] : memref<1x8x64xbf16, #tpu.memory_space<vmem>>, vector<1x8x64xbf16>
    %34 = vector.shape_cast %33 : vector<1x8x64xbf16> to vector<8x64xbf16>
    %35 = vector.shape_cast %32 : vector<8x64xbf16> to vector<1x8x64xbf16>
    tpu.vector_store %arg6[%c0_15, %c0_16, %c0_17], %35 {strides = array<i32>} : memref<1x8x64xbf16, #tpu.memory_space<vmem>>, vector<1x8x64xbf16>,
    return
  }
  func.func @transform_0(%arg0: i32) -> (i32, i32, i32) {
    %c0_i32 = arith.constant 0 : i32
    %c0_i32_0 = arith.constant 0 : i32
    %c0_i32_1 = arith.constant 0 : i32
    return %arg0, %c0_i32, %c0_i32_0 : i32, i32, i32
  }
  func.func @transform_1(%arg0: i32) -> (i32, i32) {
    %c0_i32 = arith.constant 0 : i32
    %c0_i32_0 = arith.constant 0 : i32
    %c0_i32_1 = arith.constant 0 : i32
    return %c0_i32, %c0_i32_0 : i32, i32
  }
  func.func @transform_2(%arg0: i32) -> (i32, i32) {
    %c0_i32 = arith.constant 0 : i32
    %c0_i32_0 = arith.constant 0 : i32
    %c0_i32_1 = arith.constant 0 : i32
    return %c0_i32, %c0_i32_0 : i32, i32
  }
  func.func @transform_3(%arg0: i32) -> (i32, i32) {
    %c0_i32 = arith.constant 0 : i32
    %c0_i32_0 = arith.constant 0 : i32
    %c0_i32_1 = arith.constant 0 : i32
    return %c0_i32, %c0_i32_0 : i32, i32
  }
  func.func @transform_4(%arg0: i32) -> (i32, i32) {
    %c0_i32 = arith.constant 0 : i32
    %c0_i32_0 = arith.constant 0 : i32
    %c0_i32_1 = arith.constant 0 : i32
    return %c0_i32, %c0_i32_0 : i32, i32
  }
  func.func @transform_5(%arg0: i32) -> (i32, i32, i32) {
    %c0_i32 = arith.constant 0 : i32
    %c0_i32_0 = arith.constant 0 : i32
    %c0_i32_1 = arith.constant 0 : i32
    return %arg0, %c0_i32, %c0_i32_0 : i32, i32, i32
  }
}

module attributes {stable_mosaic.version = 11 : i64} {
  func.func @_block_kernel(%arg0: i32, %arg1: i32, %arg2: memref<1x8x32xf32, #tpu.memory_space<vmem>>, %arg3: memref<1x8x64xbf16, #tpu.memory_space<vmem>>, %arg4: memref<1x32xf32, #tpu.memory_space<vmem>>, %arg5: memref<1x32xf32, #tpu.memory_space<vmem>>, %arg6: memref<32x32xbf16, #tpu.memory_space<vmem>>, %arg7: memref<1x32xf32, #tpu.memory_space<vmem>>, %arg8: memref<32x32xbf16, #tpu.memory_space<vmem>>, %arg9: memref<1x32xf32, #tpu.memory_space<vmem>>, %arg10: memref<1x32xf32, #tpu.memory_space<vmem>>, %arg11: memref<1x32xf32, #tpu.memory_space<vmem>>, %arg12: memref<32x128xbf16, #tpu.memory_space<vmem>>, %arg13: memref<1x128xf32, #tpu.memory_space<vmem>>, %arg14: memref<128x32xbf16, #tpu.memory_space<vmem>>, %arg15: memref<1x32xf32, #tpu.memory_space<vmem>>, %arg16: memref<1x8x32xf32, #tpu.memory_space<vmem>>) attributes {dimension_semantics = [#tpu.dimension_semantics<parallel>, #tpu.dimension_semantics<parallel>], iteration_bounds = array<i64: 2, 1>, scalar_prefetch = 0 : i64, scratch_operands = 0 : i64, tpu.core_type = #tpu.core_type<tc>, window_params = [{transform_indices = @transform_0, window_bounds = array<i64: 1, 8, 32>}, {transform_indices = @transform_1, window_bounds = array<i64: 1, 8, 64>}, {pipeline_mode = #tpu.pipeline_mode<synchronous>, transform_indices = @transform_2, window_bounds = array<i64: 1, 32>}, {pipeline_mode = #tpu.pipeline_mode<synchronous>, transform_indices = @transform_3, window_bounds = array<i64: 1, 32>}, {pipeline_mode = #tpu.pipeline_mode<synchronous>, transform_indices = @transform_4, window_bounds = array<i64: 32, 32>}, {pipeline_mode = #tpu.pipeline_mode<synchronous>, transform_indices = @transform_5, window_bounds = array<i64: 1, 32>}, {pipeline_mode = #tpu.pipeline_mode<synchronous>, transform_indices = @transform_6, window_bounds = array<i64: 32, 32>}, {pipeline_mode = #tpu.pipeline_mode<synchronous>, transform_indices = @transform_7, window_bounds = array<i64: 1, 32>}, {pipeline_mode = #tpu.pipeline_mode<synchronous>, transform_indices = @transform_8, window_bounds = array<i64: 1, 32>}, {pipeline_mode = #tpu.pipeline_mode<synchronous>, transform_indices = @transform_9, window_bounds = array<i64: 1, 32>}, {pipeline_mode = #tpu.pipeline_mode<synchronous>, transform_indices = @transform_10, window_bounds = array<i64: 32, 128>}, {pipeline_mode = #tpu.pipeline_mode<synchronous>, transform_indices = @transform_11, window_bounds = array<i64: 1, 128>}, {pipeline_mode = #tpu.pipeline_mode<synchronous>, transform_indices = @transform_12, window_bounds = array<i64: 128, 32>}, {pipeline_mode = #tpu.pipeline_mode<synchronous>, transform_indices = @transform_13, window_bounds = array<i64: 1, 32>}, {transform_indices = @transform_14, window_bounds = array<i64: 1, 8, 32>}]} {
    %c0 = arith.constant 0 : index
    %c0_0 = arith.constant 0 : index
    %c0_1 = arith.constant 0 : index
    %0 = vector.load %arg2[%c0, %c0_0, %c0_1] : memref<1x8x32xf32, #tpu.memory_space<vmem>>, vector<1x8x32xf32>
    %1 = vector.shape_cast %0 : vector<1x8x32xf32> to vector<8x32xf32>
    %c0_2 = arith.constant 0 : index
    %c0_3 = arith.constant 0 : index
    %2 = vector.load %arg4[%c0_2, %c0_3] : memref<1x32xf32, #tpu.memory_space<vmem>>, vector<1x32xf32>
    %c0_4 = arith.constant 0 : index
    %c0_5 = arith.constant 0 : index
    %3 = vector.load %arg5[%c0_4, %c0_5] : memref<1x32xf32, #tpu.memory_space<vmem>>, vector<1x32xf32>
    %cst = arith.constant dense<0.000000e+00> : vector<8xf32>
    %4 = vector.multi_reduction <add>, %1, %cst [1] : vector<8x32xf32> to vector<8xf32>
    %5 = vector.shape_cast %4 : vector<8xf32> to vector<8x1xf32>
    %cst_6 = arith.constant 3.200000e+01 : f32
    %6 = vector.broadcast %cst_6 : f32 to vector<8x1xf32>
    %7 = arith.divf %5, %6 : vector<8x1xf32>
    %8 = vector.broadcast %7 : vector<8x1xf32> to vector<8x32xf32>
    %9 = arith.subf %1, %8 : vector<8x32xf32>
    %10 = arith.mulf %9, %9 : vector<8x32xf32>
    %cst_7 = arith.constant dense<0.000000e+00> : vector<8xf32>
    %11 = vector.multi_reduction <add>, %10, %cst_7 [1] : vector<8x32xf32> to vector<8xf32>
    %12 = vector.shape_cast %11 : vector<8xf32> to vector<8x1xf32>
    %cst_8 = arith.constant 3.200000e+01 : f32
    %13 = vector.broadcast %cst_8 : f32 to vector<8x1xf32>
    %14 = arith.divf %12, %13 : vector<8x1xf32>
    %15 = vector.broadcast %7 : vector<8x1xf32> to vector<8x32xf32>
    %16 = arith.subf %1, %15 : vector<8x32xf32>
    %cst_9 = arith.constant 9.99999974E-6 : f32
    %17 = vector.broadcast %cst_9 : f32 to vector<8x1xf32>
    %18 = arith.addf %14, %17 : vector<8x1xf32>
    %19 = math.rsqrt %18 : vector<8x1xf32>
    %20 = vector.broadcast %19 : vector<8x1xf32> to vector<8x32xf32>
    %21 = arith.mulf %16, %20 : vector<8x32xf32>
    %22 = vector.broadcast %2 : vector<1x32xf32> to vector<8x32xf32>
    %23 = arith.mulf %21, %22 : vector<8x32xf32>
    %24 = vector.broadcast %3 : vector<1x32xf32> to vector<8x32xf32>
    %25 = arith.addf %23, %24 : vector<8x32xf32>
    %26 = arith.truncf %25 : vector<8x32xf32> to vector<8x32xbf16>
    %c0_10 = arith.constant 0 : index
    %c0_11 = arith.constant 0 : index
    %27 = vector.load %arg6[%c0_10, %c0_11] : memref<32x32xbf16, #tpu.memory_space<vmem>>, vector<32x32xbf16>
    %cst_12 = arith.constant dense<0.000000e+00> : vector<8x32xf32>
    %28 = tpu.matmul %26, %27, %cst_12 {dimension_numbers = #tpu.dot_dimension_numbers<[1], [0], [0], [1], [0, 0, 1, 1], [], []>} : vector<8x32xbf16>, vector<32x32xbf16>, vector<8x32xf32> -> vector<8x32xf32>
    %c0_13 = arith.constant 0 : index
    %c0_14 = arith.constant 0 : index
    %29 = vector.load %arg7[%c0_13, %c0_14] : memref<1x32xf32, #tpu.memory_space<vmem>>, vector<1x32xf32>
    %30 = vector.broadcast %29 : vector<1x32xf32> to vector<8x32xf32>
    %31 = arith.addf %28, %30 : vector<8x32xf32>
    %32 = arith.truncf %31 : vector<8x32xf32> to vector<8x32xbf16>
    %c0_15 = arith.constant 0 : index
    %c0_16 = arith.constant 0 : index
    %c0_17 = arith.constant 0 : index
    %33 = vector.load %arg3[%c0_15, %c0_16, %c0_17] : memref<1x8x64xbf16, #tpu.memory_space<vmem>>, vector<1x8x64xbf16>
    %34 = vector.shape_cast %33 : vector<1x8x64xbf16> to vector<8x64xbf16>
    %35 = vector.extract_strided_slice %34 {offsets = [0, 0], sizes = [8, 32], strides = [1, 1]} : vector<8x64xbf16> to vector<8x32xbf16>
    %36 = vector.extract_strided_slice %34 {offsets = [0, 32], sizes = [8, 32], strides = [1, 1]} : vector<8x64xbf16> to vector<8x32xbf16>
    %37 = vector.extract_strided_slice %32 {offsets = [0, 0], sizes = [8, 8], strides = [1, 1]} : vector<8x32xbf16> to vector<8x8xbf16>
    %38 = vector.extract_strided_slice %35 {offsets = [0, 0], sizes = [8, 8], strides = [1, 1]} : vector<8x32xbf16> to vector<8x8xbf16>
    %cst_18 = arith.constant dense<0.000000e+00> : vector<8x8xf32>
    %39 = tpu.matmul %37, %38, %cst_18 {dimension_numbers = #tpu.dot_dimension_numbers<[1], [1], [0], [0], [0, 0, 1, 0], [], []>} : vector<8x8xbf16>, vector<8x8xbf16>, vector<8x8xf32> -> vector<8x8xf32>
    %cst_19 = arith.constant dense<0xFF800000> : vector<8xf32>
    %40 = vector.multi_reduction <maximumf>, %39, %cst_19 [1] : vector<8x8xf32> to vector<8xf32>
    %41 = vector.shape_cast %40 : vector<8xf32> to vector<8x1xf32>
    %42 = vector.broadcast %41 : vector<8x1xf32> to vector<8x8xf32>
    %43 = arith.subf %39, %42 : vector<8x8xf32>
    %44 = math.exp %43 : vector<8x8xf32>
    %cst_20 = arith.constant dense<0.000000e+00> : vector<8xf32>
    %45 = vector.multi_reduction <add>, %44, %cst_20 [1] : vector<8x8xf32> to vector<8xf32>
    %46 = vector.shape_cast %45 : vector<8xf32> to vector<8x1xf32>
    %47 = tpu.reciprocal %46 {approx = true} : vector<8x1xf32> -> vector<8x1xf32>
    %48 = vector.broadcast %47 : vector<8x1xf32> to vector<8x8xf32>
    %49 = arith.mulf %44, %48 : vector<8x8xf32>
    %50 = arith.truncf %49 : vector<8x8xf32> to vector<8x8xbf16>
    %51 = vector.extract_strided_slice %36 {offsets = [0, 0], sizes = [8, 8], strides = [1, 1]} : vector<8x32xbf16> to vector<8x8xbf16>
    %cst_21 = arith.constant dense<0.000000e+00> : vector<8x8xf32>
    %52 = tpu.matmul %50, %51, %cst_21 {dimension_numbers = #tpu.dot_dimension_numbers<[1], [0], [0], [1], [0, 0, 1, 1], [], []>} : vector<8x8xbf16>, vector<8x8xbf16>, vector<8x8xf32> -> vector<8x8xf32>
    %53 = vector.extract_strided_slice %32 {offsets = [0, 8], sizes = [8, 8], strides = [1, 1]} : vector<8x32xbf16> to vector<8x8xbf16>
    %54 = vector.extract_strided_slice %35 {offsets = [0, 8], sizes = [8, 8], strides = [1, 1]} : vector<8x32xbf16> to vector<8x8xbf16>
    %cst_22 = arith.constant dense<0.000000e+00> : vector<8x8xf32>
    %55 = tpu.matmul %53, %54, %cst_22 {dimension_numbers = #tpu.dot_dimension_numbers<[1], [1], [0], [0], [0, 0, 1, 0], [], []>} : vector<8x8xbf16>, vector<8x8xbf16>, vector<8x8xf32> -> vector<8x8xf32>
    %cst_23 = arith.constant dense<0xFF800000> : vector<8xf32>
    %56 = vector.multi_reduction <maximumf>, %55, %cst_23 [1] : vector<8x8xf32> to vector<8xf32>
    %57 = vector.shape_cast %56 : vector<8xf32> to vector<8x1xf32>
    %58 = vector.broadcast %57 : vector<8x1xf32> to vector<8x8xf32>
    %59 = arith.subf %55, %58 : vector<8x8xf32>
    %60 = math.exp %59 : vector<8x8xf32>
    %cst_24 = arith.constant dense<0.000000e+00> : vector<8xf32>
    %61 = vector.multi_reduction <add>, %60, %cst_24 [1] : vector<8x8xf32> to vector<8xf32>
    %62 = vector.shape_cast %61 : vector<8xf32> to vector<8x1xf32>
    %63 = tpu.reciprocal %62 {approx = true} : vector<8x1xf32> -> vector<8x1xf32>
    %64 = vector.broadcast %63 : vector<8x1xf32> to vector<8x8xf32>
    %65 = arith.mulf %60, %64 : vector<8x8xf32>
    %66 = arith.truncf %65 : vector<8x8xf32> to vector<8x8xbf16>
    %67 = vector.extract_strided_slice %36 {offsets = [0, 8], sizes = [8, 8], strides = [1, 1]} : vector<8x32xbf16> to vector<8x8xbf16>
    %cst_25 = arith.constant dense<0.000000e+00> : vector<8x8xf32>
    %68 = tpu.matmul %66, %67, %cst_25 {dimension_numbers = #tpu.dot_dimension_numbers<[1], [0], [0], [1], [0, 0, 1, 1], [], []>} : vector<8x8xbf16>, vector<8x8xbf16>, vector<8x8xf32> -> vector<8x8xf32>
    %69 = vector.extract_strided_slice %32 {offsets = [0, 16], sizes = [8, 8], strides = [1, 1]} : vector<8x32xbf16> to vector<8x8xbf16>
    %70 = vector.extract_strided_slice %35 {offsets = [0, 16], sizes = [8, 8], strides = [1, 1]} : vector<8x32xbf16> to vector<8x8xbf16>
    %cst_26 = arith.constant dense<0.000000e+00> : vector<8x8xf32>
    %71 = tpu.matmul %69, %70, %cst_26 {dimension_numbers = #tpu.dot_dimension_numbers<[1], [1], [0], [0], [0, 0, 1, 0], [], []>} : vector<8x8xbf16>, vector<8x8xbf16>, vector<8x8xf32> -> vector<8x8xf32>
    %cst_27 = arith.constant dense<0xFF800000> : vector<8xf32>
    %72 = vector.multi_reduction <maximumf>, %71, %cst_27 [1] : vector<8x8xf32> to vector<8xf32>
    %73 = vector.shape_cast %72 : vector<8xf32> to vector<8x1xf32>
    %74 = vector.broadcast %73 : vector<8x1xf32> to vector<8x8xf32>
    %75 = arith.subf %71, %74 : vector<8x8xf32>
    %76 = math.exp %75 : vector<8x8xf32>
    %cst_28 = arith.constant dense<0.000000e+00> : vector<8xf32>
    %77 = vector.multi_reduction <add>, %76, %cst_28 [1] : vector<8x8xf32> to vector<8xf32>
    %78 = vector.shape_cast %77 : vector<8xf32> to vector<8x1xf32>
    %79 = tpu.reciprocal %78 {approx = true} : vector<8x1xf32> -> vector<8x1xf32>
    %80 = vector.broadcast %79 : vector<8x1xf32> to vector<8x8xf32>
    %81 = arith.mulf %76, %80 : vector<8x8xf32>
    %82 = arith.truncf %81 : vector<8x8xf32> to vector<8x8xbf16>
    %83 = vector.extract_strided_slice %36 {offsets = [0, 16], sizes = [8, 8], strides = [1, 1]} : vector<8x32xbf16> to vector<8x8xbf16>
    %cst_29 = arith.constant dense<0.000000e+00> : vector<8x8xf32>
    %84 = tpu.matmul %82, %83, %cst_29 {dimension_numbers = #tpu.dot_dimension_numbers<[1], [0], [0], [1], [0, 0, 1, 1], [], []>} : vector<8x8xbf16>, vector<8x8xbf16>, vector<8x8xf32> -> vector<8x8xf32>
    %85 = vector.extract_strided_slice %32 {offsets = [0, 24], sizes = [8, 8], strides = [1, 1]} : vector<8x32xbf16> to vector<8x8xbf16>
    %86 = vector.extract_strided_slice %35 {offsets = [0, 24], sizes = [8, 8], strides = [1, 1]} : vector<8x32xbf16> to vector<8x8xbf16>
    %cst_30 = arith.constant dense<0.000000e+00> : vector<8x8xf32>
    %87 = tpu.matmul %85, %86, %cst_30 {dimension_numbers = #tpu.dot_dimension_numbers<[1], [1], [0], [0], [0, 0, 1, 0], [], []>} : vector<8x8xbf16>, vector<8x8xbf16>, vector<8x8xf32> -> vector<8x8xf32>
    %cst_31 = arith.constant dense<0xFF800000> : vector<8xf32>
    %88 = vector.multi_reduction <maximumf>, %87, %cst_31 [1] : vector<8x8xf32> to vector<8xf32>
    %89 = vector.shape_cast %88 : vector<8xf32> to vector<8x1xf32>
    %90 = vector.broadcast %89 : vector<8x1xf32> to vector<8x8xf32>
    %91 = arith.subf %87, %90 : vector<8x8xf32>
    %92 = math.exp %91 : vector<8x8xf32>
    %cst_32 = arith.constant dense<0.000000e+00> : vector<8xf32>
    %93 = vector.multi_reduction <add>, %92, %cst_32 [1] : vector<8x8xf32> to vector<8xf32>
    %94 = vector.shape_cast %93 : vector<8xf32> to vector<8x1xf32>
    %95 = tpu.reciprocal %94 {approx = true} : vector<8x1xf32> -> vector<8x1xf32>
    %96 = vector.broadcast %95 : vector<8x1xf32> to vector<8x8xf32>
    %97 = arith.mulf %92, %96 : vector<8x8xf32>
    %98 = arith.truncf %97 : vector<8x8xf32> to vector<8x8xbf16>
    %99 = vector.extract_strided_slice %36 {offsets = [0, 24], sizes = [8, 8], strides = [1, 1]} : vector<8x32xbf16> to vector<8x8xbf16>
    %cst_33 = arith.constant dense<0.000000e+00> : vector<8x8xf32>
    %100 = tpu.matmul %98, %99, %cst_33 {dimension_numbers = #tpu.dot_dimension_numbers<[1], [0], [0], [1], [0, 0, 1, 1], [], []>} : vector<8x8xbf16>, vector<8x8xbf16>, vector<8x8xf32> -> vector<8x8xf32>
    %101 = tpu.concatenate %52, %68, %84, %100 in 1 : vector<8x8xf32>, vector<8x8xf32>, vector<8x8xf32>, vector<8x8xf32> -> vector<8x32xf32>
    %102 = arith.truncf %101 : vector<8x32xf32> to vector<8x32xbf16>
    %c0_34 = arith.constant 0 : index
    %c0_35 = arith.constant 0 : index
    %103 = vector.load %arg8[%c0_34, %c0_35] : memref<32x32xbf16, #tpu.memory_space<vmem>>, vector<32x32xbf16>
    %cst_36 = arith.constant dense<0.000000e+00> : vector<8x32xf32>
    %104 = tpu.matmul %102, %103, %cst_36 {dimension_numbers = #tpu.dot_dimension_numbers<[1], [0], [0], [1], [0, 0, 1, 1], [], []>} : vector<8x32xbf16>, vector<32x32xbf16>, vector<8x32xf32> -> vector<8x32xf32>
    %c0_37 = arith.constant 0 : index
    %c0_38 = arith.constant 0 : index
    %105 = vector.load %arg9[%c0_37, %c0_38] : memref<1x32xf32, #tpu.memory_space<vmem>>, vector<1x32xf32>
    %106 = vector.broadcast %105 : vector<1x32xf32> to vector<8x32xf32>
    %107 = arith.addf %104, %106 : vector<8x32xf32>
    %108 = arith.addf %1, %107 : vector<8x32xf32>
    %c0_39 = arith.constant 0 : index
    %c0_40 = arith.constant 0 : index
    %109 = vector.load %arg10[%c0_39, %c0_40] : memref<1x32xf32, #tpu.memory_space<vmem>>, vector<1x32xf32>
    %c0_41 = arith.constant 0 : index
    %c0_42 = arith.constant 0 : index
    %110 = vector.load %arg11[%c0_41, %c0_42] : memref<1x32xf32, #tpu.memory_space<vmem>>, vector<1x32xf32>
    %cst_43 = arith.constant dense<0.000000e+00> : vector<8xf32>
    %111 = vector.multi_reduction <add>, %108, %cst_43 [1] : vector<8x32xf32> to vector<8xf32>
    %112 = vector.shape_cast %111 : vector<8xf32> to vector<8x1xf32>
    %cst_44 = arith.constant 3.200000e+01 : f32
    %113 = vector.broadcast %cst_44 : f32 to vector<8x1xf32>
    %114 = arith.divf %112, %113 : vector<8x1xf32>
    %115 = vector.broadcast %114 : vector<8x1xf32> to vector<8x32xf32>
    %116 = arith.subf %108, %115 : vector<8x32xf32>
    %117 = arith.mulf %116, %116 : vector<8x32xf32>
    %cst_45 = arith.constant dense<0.000000e+00> : vector<8xf32>
    %118 = vector.multi_reduction <add>, %117, %cst_45 [1] : vector<8x32xf32> to vector<8xf32>
    %119 = vector.shape_cast %118 : vector<8xf32> to vector<8x1xf32>
    %cst_46 = arith.constant 3.200000e+01 : f32
    %120 = vector.broadcast %cst_46 : f32 to vector<8x1xf32>
    %121 = arith.divf %119, %120 : vector<8x1xf32>
    %122 = vector.broadcast %114 : vector<8x1xf32> to vector<8x32xf32>
    %123 = arith.subf %108, %122 : vector<8x32xf32>
    %cst_47 = arith.constant 9.99999974E-6 : f32
    %124 = vector.broadcast %cst_47 : f32 to vector<8x1xf32>
    %125 = arith.addf %121, %124 : vector<8x1xf32>
    %126 = math.rsqrt %125 : vector<8x1xf32>
    %127 = vector.broadcast %126 : vector<8x1xf32> to vector<8x32xf32>
    %128 = arith.mulf %123, %127 : vector<8x32xf32>
    %129 = vector.broadcast %109 : vector<1x32xf32> to vector<8x32xf32>
    %130 = arith.mulf %128, %129 : vector<8x32xf32>
    %131 = vector.broadcast %110 : vector<1x32xf32> to vector<8x32xf32>
    %132 = arith.addf %130, %131 : vector<8x32xf32>
    %133 = arith.truncf %132 : vector<8x32xf32> to vector<8x32xbf16>
    %cst_48 = arith.constant 0.000000e+00 : f32
    %134 = vector.broadcast %cst_48 : f32 to vector<8x32xf32>
    %c0_49 = arith.constant 0 : index
    %c0_50 = arith.constant 0 : index
    %135 = vector.load %arg12[%c0_49, %c0_50] : memref<32x128xbf16, #tpu.memory_space<vmem>>, vector<32x128xbf16>
    %cst_51 = arith.constant dense<0.000000e+00> : vector<8x128xf32>
    %136 = tpu.matmul %133, %135, %cst_51 {dimension_numbers = #tpu.dot_dimension_numbers<[1], [0], [0], [1], [0, 0, 1, 1], [], []>} : vector<8x32xbf16>, vector<32x128xbf16>, vector<8x128xf32> -> vector<8x128xf32>
    %c0_52 = arith.constant 0 : index
    %c0_53 = arith.constant 0 : index
    %137 = vector.load %arg13[%c0_52, %c0_53] : memref<1x128xf32, #tpu.memory_space<vmem>>, vector<1x128xf32>
    %138 = vector.broadcast %137 : vector<1x128xf32> to vector<8x128xf32>
    %139 = arith.addf %136, %138 : vector<8x128xf32>
    %cst_54 = arith.constant 5.000000e-01 : f32
    %140 = vector.broadcast %cst_54 : f32 to vector<8x128xf32>
    %141 = arith.mulf %140, %139 : vector<8x128xf32>
    %cst_55 = arith.constant 0.707106769 : f32
    %142 = vector.broadcast %cst_55 : f32 to vector<8x128xf32>
    %143 = arith.mulf %139, %142 : vector<8x128xf32>
    %144 = math.erf %143 : vector<8x128xf32>
    %cst_56 = arith.constant 1.000000e+00 : f32
    %145 = vector.broadcast %cst_56 : f32 to vector<8x128xf32>
    %146 = arith.addf %145, %144 : vector<8x128xf32>
    %147 = arith.mulf %141, %146 : vector<8x128xf32>
    %148 = arith.truncf %147 : vector<8x128xf32> to vector<8x128xbf16>
    %c0_57 = arith.constant 0 : index
    %c0_58 = arith.constant 0 : index
    %149 = vector.load %arg14[%c0_57, %c0_58] : memref<128x32xbf16, #tpu.memory_space<vmem>>, vector<128x32xbf16>
    %cst_59 = arith.constant dense<0.000000e+00> : vector<8x32xf32>
    %150 = tpu.matmul %148, %149, %cst_59 {dimension_numbers = #tpu.dot_dimension_numbers<[1], [0], [0], [1], [0, 0, 1, 1], [], []>} : vector<8x128xbf16>, vector<128x32xbf16>, vector<8x32xf32> -> vector<8x32xf32>
    %151 = arith.addf %134, %150 : vector<8x32xf32>
    %152 = arith.addf %108, %151 : vector<8x32xf32>
    %c0_60 = arith.constant 0 : index
    %c0_61 = arith.constant 0 : index
    %153 = vector.load %arg15[%c0_60, %c0_61] : memref<1x32xf32, #tpu.memory_space<vmem>>, vector<1x32xf32>
    %154 = vector.broadcast %153 : vector<1x32xf32> to vector<8x32xf32>
    %155 = arith.addf %152, %154 : vector<8x32xf32>
    %c0_62 = arith.constant 0 : index
    %c0_63 = arith.constant 0 : index
    %c0_64 = arith.constant 0 : index
    %156 = vector.load %arg16[%c0_62, %c0_63, %c0_64] : memref<1x8x32xf32, #tpu.memory_space<vmem>>, vector<1x8x32xf32>
    %157 = vector.shape_cast %156 : vector<1x8x32xf32> to vector<8x32xf32>
    %158 = vector.shape_cast %155 : vector<8x32xf32> to vector<1x8x32xf32>
    tpu.vector_store %arg16[%c0_62, %c0_63, %c0_64], %158 {strides = array<i32>} : memref<1x8x32xf32, #tpu.memory_space<vmem>>, vector<1x8x32xf32>,
    return
  }
  func.func @transform_0(%arg0: i32, %arg1: i32) -> (i32, i32, i32) {
    %c0_i32 = arith.constant 0 : i32
    %c0_i32_0 = arith.constant 0 : i32
    return %arg0, %arg1, %c0_i32 : i32, i32, i32
  }
  func.func @transform_1(%arg0: i32, %arg1: i32) -> (i32, i32, i32) {
    %c0_i32 = arith.constant 0 : i32
    %c0_i32_0 = arith.constant 0 : i32
    %c0_i32_1 = arith.constant 0 : i32
    return %arg0, %c0_i32, %c0_i32_0 : i32, i32, i32
  }
  func.func @transform_2(%arg0: i32, %arg1: i32) -> (i32, i32) {
    %c0_i32 = arith.constant 0 : i32
    %c0_i32_0 = arith.constant 0 : i32
    %c0_i32_1 = arith.constant 0 : i32
    return %c0_i32, %c0_i32_0 : i32, i32
  }
  func.func @transform_3(%arg0: i32, %arg1: i32) -> (i32, i32) {
    %c0_i32 = arith.constant 0 : i32
    %c0_i32_0 = arith.constant 0 : i32
    %c0_i32_1 = arith.constant 0 : i32
    return %c0_i32, %c0_i32_0 : i32, i32
  }
  func.func @transform_4(%arg0: i32, %arg1: i32) -> (i32, i32) {
    %c0_i32 = arith.constant 0 : i32
    %c0_i32_0 = arith.constant 0 : i32
    %c0_i32_1 = arith.constant 0 : i32
    return %c0_i32, %c0_i32_0 : i32, i32
  }
  func.func @transform_5(%arg0: i32, %arg1: i32) -> (i32, i32) {
    %c0_i32 = arith.constant 0 : i32
    %c0_i32_0 = arith.constant 0 : i32
    %c0_i32_1 = arith.constant 0 : i32
    return %c0_i32, %c0_i32_0 : i32, i32
  }
  func.func @transform_6(%arg0: i32, %arg1: i32) -> (i32, i32) {
    %c0_i32 = arith.constant 0 : i32
    %c0_i32_0 = arith.constant 0 : i32
    %c0_i32_1 = arith.constant 0 : i32
    return %c0_i32, %c0_i32_0 : i32, i32
  }
  func.func @transform_7(%arg0: i32, %arg1: i32) -> (i32, i32) {
    %c0_i32 = arith.constant 0 : i32
    %c0_i32_0 = arith.constant 0 : i32
    %c0_i32_1 = arith.constant 0 : i32
    return %c0_i32, %c0_i32_0 : i32, i32
  }
  func.func @transform_8(%arg0: i32, %arg1: i32) -> (i32, i32) {
    %c0_i32 = arith.constant 0 : i32
    %c0_i32_0 = arith.constant 0 : i32
    %c0_i32_1 = arith.constant 0 : i32
    return %c0_i32, %c0_i32_0 : i32, i32
  }
  func.func @transform_9(%arg0: i32, %arg1: i32) -> (i32, i32) {
    %c0_i32 = arith.constant 0 : i32
    %c0_i32_0 = arith.constant 0 : i32
    %c0_i32_1 = arith.constant 0 : i32
    return %c0_i32, %c0_i32_0 : i32, i32
  }
  func.func @transform_10(%arg0: i32, %arg1: i32) -> (i32, i32) {
    %c0_i32 = arith.constant 0 : i32
    %c0_i32_0 = arith.constant 0 : i32
    %c0_i32_1 = arith.constant 0 : i32
    return %c0_i32, %c0_i32_0 : i32, i32
  }
  func.func @transform_11(%arg0: i32, %arg1: i32) -> (i32, i32) {
    %c0_i32 = arith.constant 0 : i32
    %c0_i32_0 = arith.constant 0 : i32
    %c0_i32_1 = arith.constant 0 : i32
    return %c0_i32, %c0_i32_0 : i32, i32
  }
  func.func @transform_12(%arg0: i32, %arg1: i32) -> (i32, i32) {
    %c0_i32 = arith.constant 0 : i32
    %c0_i32_0 = arith.constant 0 : i32
    %c0_i32_1 = arith.constant 0 : i32
    return %c0_i32, %c0_i32_0 : i32, i32
  }
  func.func @transform_13(%arg0: i32, %arg1: i32) -> (i32, i32) {
    %c0_i32 = arith.constant 0 : i32
    %c0_i32_0 = arith.constant 0 : i32
    %c0_i32_1 = arith.constant 0 : i32
    return %c0_i32, %c0_i32_0 : i32, i32
  }
  func.func @transform_14(%arg0: i32, %arg1: i32) -> (i32, i32, i32) {
    %c0_i32 = arith.constant 0 : i32
    %c0_i32_0 = arith.constant 0 : i32
    return %arg0, %arg1, %c0_i32 : i32, i32, i32
  }
}

</mosaic_0001>

<bundles_post_ra>
// kernel: transformer_forward.4
= control target key start
LH: loop header
LB: loop body
LE: loop exit
PB: predicated region body
PF: predicated region fallthrough
CT: control target
= control target key end

     0   :  { %s456_s18 = smov 0   ;;  %s495_s0 = inlined_call_operand.vmem [shape: f32[2,8,32], index: 0, kind: input, shape index: {}]   ;;  %s496_s1 = inlined_call_operand.vmem [shape: f32[1,32], index: 1, kind: input, shape index: {}]   ;;  %s497_s2 = inlined_call_operand.vmem [shape: f32[1,32], index: 2, kind: input, shape index: {}]   ;;  %s498_s3 = inlined_call_operand.vmem [shape: bf16[32,64], index: 3, kind: input, shape index: {}]   ;;  %s499_s4 = inlined_call_operand.vmem [shape: f32[1,64], index: 4, kind: input, shape index: {}]   ;;  %s500_s5 = inlined_call_operand.vmem [shape: bf16[2,8,64], index: 5, kind: output, shape index: {}]  }
   0x1 LB: > { %s376_s19 = sadd.s32 4294967295, %s422_s18   ;;  %p380_p0 = scmp.ge.s32.totalorder %s422_s18, 1  ;;  %s422_s18 = sphi %s456_s18, %s15_s18  }
   0x2   : > { %p186_p1 = scmp.lt.s32.totalorder %s422_s18, 3 }
   0x4   : > { %p187_p2 = pnand %p380_p0, %p186_p1 }
   0x5   : > { %p212_p3 = scmp.lt.s32.totalorder (!%p187_p2), %s376_s19, 1  ;;  %vm224_vm0 = vcmask (!%p187_p2), 261120   ;;  %v412_v7 = vld [vmem:[%s498_s3] sm:$0xff] (!%p187_p2)   ;;  %v424_v8 = vmov (!%p187_p2), 0.0   ;;  %v413_v9 = vld [vmem:[%s498_s3 + $0x8] sm:$0xff] (!%p187_p2)   ;;  %vm425_vm1 = vmmov (!%p187_p2), 0  }
   0x6   : > { %190 = sbr.rel (%p187_p2) target bundleno = 549 (0x225), region = 40  ;;  %394 = vmatprep.subr.bf16.mxu0 (!%p187_p2), %v424_v8  ;;  %398 = vmatprep.mubr.msk.bf16.mxu0 (!%p187_p2), %vm425_vm1, %v424_v8  ;;  %v383_v14 = vld [vmem:[%s496_s1] ss:$0 sm:$0xff] (!%p187_p2)  ;;  %vm321_vm2 = vcmask (!%p187_p2), 519168  }
   0x7   : > { %395 = vmatpush3.bf16.msra.mxu0 (!%p187_p2), %v412_v7  ;;  %v384_v16 = vld [vmem:[%s497_s2] ss:$0 sm:$0xff] (!%p187_p2) }
   0x8   : > { %396 = vmatprep.subr.bf16.mxu0 (!%p187_p2), %v424_v8  ;;  %v385_v20 = vld [vmem:[%s499_s4] ss:$0 sm:$0xff] (!%p187_p2) }
   0xb   : > { %397 = vmatpush3.bf16.msra.mxu0 (!%p187_p2), %v413_v9 }
   0xd   : > { %s502_s19 = smov (!%p212_p3, %s376_s19), 1 }
   0xe   : > { %s381_s20 = sshll.u32 %s502_s19, 3  ;;  %s382_s9 = sshll.u32 %s502_s19, 2 }
   0xf   : > { %s215_s23 = scalar_lea.vmem %s495_s0, %s381_s20  ;;  %s219_s12 = scalar_lea.vmem %s500_s5, %s382_s9 }
  0x10   : > { %v221_v0 = vld [vmem:[%s215_s23] sm:$0xff] }
  0x11   : > { %v225_v1 = vsel %vm224_vm0, %v221_v0, 0.0 }
  0x12   : > { %226 = vadd.xlane.f32.xlu0 %v225_v1 }
  0x9f   : > { %v227_v2 = vpop.xlane.xlu0 %226 }
  0xa0   : > { %v229_v3 = vmul.f32 0.03125, %v227_v2 }
  0xa2   : > { %v230_v4 = vsub.f32 %v221_v0, %v229_v3 }
  0xa4   : > { %v231_v5 = vmul.f32 %v230_v4, %v230_v4 }
  0xa6   : > { %v232_v6 = vsel %vm224_vm0, %v231_v5, 0.0 }
  0xa7   : > { %233 = vadd.xlane.f32.xlu0 %v232_v6 }
 0x134   : > { %v234_v10 = vpop.xlane.xlu0 %233 }
 0x135   : > { %v235_v11 = vmul.f32 0.03125, %v234_v10 }
 0x137   : > { %v236_v12 = vadd.f32 1e-05, %v235_v11 }
 0x139   : > { %414 = vrsqrt.f32 %v236_v12 }
 0x143   : > { %v415_v13 = vpop.eup %414 }
 0x144   : > { %v238_v15 = vmul.f32 %v415_v13, %v230_v4 }
 0x146   : > { %v245_v17 = vmul.f32 %v383_v14, %v238_v15 }
 0x148   : > { %v252_v18 = vadd.f32 %v384_v16, %v245_v17 }
 0x14a   : > { %v253_v19 = vpack.c.bf16 %v252_v18, %v252_v18 }
 0x14c   : > { %399 = vmatmul.mubr.msk.bf16.vlgmr.msra.gmra.mrb[0].mxu0 %vm224_vm0, %v253_v19 }
 0x21f   : > { %v314_v21 = vpop.f32.mrb[0].mxu0 }
 0x220   : > { %v315_v22 = vadd.f32 %v385_v20, %v314_v21  ;;  %v400_v23 = vpop.f32.mrb[1].mxu0 }
 0x221   : > { %v317_v24 = vpop.f32.mrb[2].mxu0 }
 0x222   : > { %v320_v25 = vpack.c.bf16 %v315_v22, %v315_v22  ;;  %v401_v26 = vpop.f32.mrb[3].mxu0 }
 0x224   : > { %322 = vst.msk [vmem:[%s219_s12] sm:$0xf] %vm321_vm2, %v320_v25 }
 0x225 PF: > { %s15_s18 = sadd.s32 1, %s422_s18  }
 0x226   : > { %p12_p4 = scmp.ge.s32.totalorder %s15_s18, 4  }
 0x228   :  { %14 = sbr.rel (!%p12_p4) target bundleno = 1 (0x1), region = 70 }

// kernel: transformer_forward.5
= control target key start
LH: loop header
LB: loop body
LE: loop exit
PB: predicated region body
PF: predicated region fallthrough
CT: control target
= control target key end

     0   :  { %s1796_s29 = smov 0   ;;  %s1798_s30 = smov 0   ;;  %s2006_s0 = inlined_call_operand.vmem [shape: f32[2,8,32], index: 0, kind: input, shape index: {}]   ;;  %s2007_s1 = inlined_call_operand.vmem [shape: bf16[2,8,64], index: 1, kind: input, shape index: {}]   ;;  %s2008_s2 = inlined_call_operand.vmem [shape: f32[1,32], index: 2, kind: input, shape index: {}]   ;;  %s2009_s3 = inlined_call_operand.vmem [shape: f32[1,32], index: 3, kind: input, shape index: {}]   ;;  %s2010_s4 = inlined_call_operand.vmem [shape: bf16[32,32], index: 4, kind: input, shape index: {}]   ;;  %s2011_s5 = inlined_call_operand.vmem [shape: f32[1,32], index: 5, kind: input, shape index: {}]   ;;  %s2012_s6 = inlined_call_operand.vmem [shape: bf16[32,32], index: 6, kind: input, shape index: {}]   ;;  %s2013_s7 = inlined_call_operand.vmem [shape: f32[1,32], index: 7, kind: input, shape index: {}]   ;;  %s2014_s8 = inlined_call_operand.vmem [shape: f32[1,32], index: 8, kind: input, shape index: {}]   ;;  %s2015_s9 = inlined_call_operand.vmem [shape: f32[1,32], index: 9, kind: input, shape index: {}]   ;;  %s2016_s10 = inlined_call_operand.vmem [shape: bf16[32,128], index: 10, kind: input, shape index: {}]   ;;  %s2017_s11 = inlined_call_operand.vmem [shape: f32[1,128], index: 11, kind: input, shape index: {}]   ;;  %s2018_s12 = inlined_call_operand.vmem [shape: bf16[128,32], index: 12, kind: input, shape index: {}]   ;;  %s2019_s13 = inlined_call_operand.vmem [shape: f32[1,32], index: 13, kind: input, shape index: {}]   ;;  %s2020_s14 = inlined_call_operand.vmem [shape: f32[2,8,32], index: 14, kind: output, shape index: {}]  }
   0x1   :  { %s1800_s15 = smov 0  }
   0x2 LB: > { %s36_s16 = sadd.s32 1, %s1703_s30  ;;  %p1446_p0 = scmp.ge.s32.totalorder %s1707_s15, 1  ;;  %s1707_s15 = sphi %s1800_s15, %s24_s15   ;;  %s1703_s30 = sphi %s1798_s30, %s2022_s30   ;;  %s1699_s29 = sphi %s1796_s29, %s2021_s29  }
   0x3   : > { %p38_p1 = scmp.ge.s32.totalorder %s36_s16, 2  ;;  %p439_p2 = scmp.lt.s32.totalorder %s1707_s15, 3 }
   0x5   : > { %s2024_s16 = smov (%p38_p1, %s36_s16), 0  ;;  %p440_p3 = pnand %p1446_p0, %p439_p2 }
   0x6   : > { %p493_p4 = scmp.lt.s32.totalorder (!%p440_p3), %s1699_s29, 1  ;;  %vm515_vm0 = vcmask (!%p440_p3), 261120   ;;  %v1649_v7 = vld [vmem:[%s2010_s4] sm:$0xff] (!%p440_p3)   ;;  %v1709_v8 = vmov (!%p440_p3), 0.0   ;;  %vm1710_vm1 = vmmov (!%p440_p3), 0   ;;  %v1650_v9 = vld [vmem:[%s2010_s4 + $0x8] sm:$0xff] (!%p440_p3)  }
   0x7   : > { %443 = sbr.rel (%p440_p3) target bundleno = 2557 (0x9fd), region = 76  ;;  %1520 = vmatprep.subr.bf16.mxu0 (!%p440_p3), %v1709_v8  ;;  %1524 = vmatprep.mubr.msk.bf16.mxu0 (!%p440_p3), %vm1710_vm1, %v1709_v8  ;;  %s1711_s18 = smov (!%p440_p3), 120   ;;  %v1450_v16 = vld [vmem:[%s2008_s2] ss:$0 sm:$0xff] (!%p440_p3)  ;;  %vm613_vm2 = vcmask (!%p440_p3), 64512   ;;  %vm680_vm3 = vcmask (!%p440_p3), 1043456  }
   0x8   : > { %1521 = vmatpush3.bf16.msra.mxu0 (!%p440_p3), %v1649_v7  ;;  %1540 = vmatprep.subr.bf16.mxu1 (!%p440_p3), %v1709_v8  ;;  %v1451_v18 = vld [vmem:[%s2009_s3] ss:$0 sm:$0xff] (!%p440_p3)  ;;  %s1712_s23 = smov (!%p440_p3), 112   ;;  %s1713_s26 = smov (!%p440_p3), 104   ;;  %vm1068_vm4 = vcmask (!%p440_p3), 130048   ;;  %vm1070_vm5 = vcmask (!%p440_p3), 195584  }
   0x9   : > { %1522 = vmatprep.subr.bf16.mxu0 (!%p440_p3), %v1709_v8  ;;  %1542 = vmatprep.mubr.msk.bf16.mxu1 (!%p440_p3), %vm1710_vm1, %v1709_v8  ;;  %v1452_v25 = vld [vmem:[%s2011_s5] ss:$0 sm:$0xff] (!%p440_p3)  ;;  %s1714_s27 = smov (!%p440_p3), 88   ;;  %s1717_s19 = smov (!%p440_p3), 80  }
   0xc   : > { %1523 = vmatpush3.bf16.msra.mxu0 (!%p440_p3), %v1650_v9 }
   0xd   : > { %1528 = vmatprep.subr.bf16.mxu0 (!%p440_p3), %v1709_v8 }
   0xe   : > { %s2026_s29 = smov (!%p493_p4, %s1699_s29), 1 }
   0xf   : > { %s1447_s17 = sshll.u32 %s2026_s29, 3  ;;  %s1448_s25 = sshll.u32 %s2026_s29, 2 }
  0x10   : > { %s499_s20 = scalar_lea.vmem %s2006_s0, %s1447_s17  ;;  %s503_s28 = scalar_lea.vmem %s2007_s1, %s1448_s25 }
  0x11   : > { %v1822_v0 = vld [vmem:[%s499_s20] sm:$0xff]  ;;  %s1718_s20 = smov 8   ;;  %s1719_s25 = smov 16  }
  0x12   : > { %v516_v1 = vsel %vm515_vm0, %v1822_v0, 0.0  ;;  %v612_v10 = vld [vmem:[%s503_s28] sm:$0xf]  ;;  %s1715_s28 = smov 96  }
  0x13   : > { %517 = vadd.xlane.f32.xlu0 %v516_v1  ;;  %v1846_v11 = vcombine.low %v612_v10, %v612_v10  ;;  %v618_v22 = vsel %vm613_vm2, %v612_v10, 0 }
  0x15   : > { %727 = vrot.lane.b32.xlu1 %v1846_v11, %s1711_s18 }
  0x87   : > { %v728_v23 = vpop.permute.xlu1 %727 }
  0x88   : > { %v733_v24 = vsel %vm613_vm2, %v728_v23, 0 }
  0x89   : > { %1541 = vmatpush3.bf16.xpose.msra.mxu1 %v733_v24 }
  0x8a   : > { %1552 = vmatprep.subr.bf16.mxu1 %v1709_v8 }
  0xa0   : > { %v518_v2 = vpop.xlane.xlu0 %517 }
  0xa1   : > { %v520_v3 = vmul.f32 0.03125, %v518_v2 }
  0xa3   : > { %v521_v4 = vsub.f32 %v1822_v0, %v520_v3 }
  0xa5   : > { %v522_v5 = vmul.f32 %v521_v4, %v521_v4 }
  0xa7   : > { %v523_v6 = vsel %vm515_vm0, %v522_v5, 0.0 }
  0xa8   : > { %524 = vadd.xlane.f32.xlu0 %v523_v6 }
  0xbe   : > { %837 = vrot.lane.b32.xlu0 %v1846_v11, %s1712_s23 }
 0x135   : > { %v525_v12 = vpop.xlane.xlu0 %524 }
 0x136   : > { %v526_v13 = vmul.f32 0.03125, %v525_v12 }
 0x138   : > { %v527_v14 = vadd.f32 1e-05, %v526_v13 }
 0x139   : > { %v838_v32 = vpop.permute.xlu0 %837 }
 0x13a   : > { %1663 = vrsqrt.f32 %v527_v14  ;;  %v843_v33 = vsel %vm613_vm2, %v838_v32, 0 }
 0x144   : > { %v1664_v15 = vpop.eup %1663 }
 0x145   : > { %v529_v17 = vmul.f32 %v1664_v15, %v521_v4 }
 0x147   : > { %v536_v19 = vmul.f32 %v1450_v16, %v529_v17 }
 0x149   : > { %v543_v20 = vadd.f32 %v1451_v18, %v536_v19 }
 0x14b   : > { %v544_v21 = vpack.c.bf16 %v543_v20, %v543_v20 }
 0x14d   : > { %1525 = vmatmul.mubr.msk.bf16.vlgmr.msra.gmra.mrb[0].mxu0 %vm515_vm0, %v544_v21 }
 0x14e   : > { %1529 = vmatpush3.bf16.xpose.msra.mxu0 %v618_v22  ;;  %1530 = vmatprep.mubr.msk.bf16.mxu0 %vm1710_vm1, %v1709_v8 }
 0x14f   : > { %1534 = vmatprep.subr.bf16.mxu0 %v1709_v8 }
 0x220   : > { %v605_v26 = vpop.f32.mrb[0].mxu0 }
 0x221   : > { %v606_v27 = vadd.f32 %v1452_v25, %v605_v26  ;;  %v1526_v28 = vpop.f32.mrb[1].mxu0 }
 0x222   : > { %v608_v29 = vpop.f32.mrb[2].mxu0 }
 0x223   : > { %v611_v30 = vpack.c.bf16 %v606_v27, %v606_v27  ;;  %v1527_v31 = vpop.f32.mrb[3].mxu0 }
 0x225   : > { %725 = vrot.lane.b32.xlu1 %v611_v30, %s1711_s18  ;;  %1531 = vmatmul.mubr.msk.bf16.vlgmr.msra.gmra.mrb[4].mxu0 %vm613_vm2, %v611_v30  ;;  %s1716_s18 = smov 72  }
 0x226   : > { %1536 = vmatprep.mubr.msk.bf16.mxu0 %vm1710_vm1, %v1709_v8 }
 0x229   : > { %835 = vrot.lane.b32.xlu1 %v611_v30, %s1712_s23 }
 0x22d   : > { %947 = vrot.lane.b32.xlu1 %v1846_v11, %s1713_s26 }
 0x231   : > { %945 = vrot.lane.b32.xlu1 %v611_v30, %s1713_s26  ;;  %s1720_s26 = smov 24  }
 0x297   : > { %v726_v34 = vpop.permute.xlu1 %725 }
 0x298   : > { %1543 = vmatmul.mubr.msk.bf16.vlgmr.msra.gmra.mrb[0].mxu1 %vm613_vm2, %v726_v34 }
 0x299   : > { %1553 = vmatpush3.bf16.xpose.msra.mxu1 %v843_v33  ;;  %1554 = vmatprep.mubr.msk.bf16.mxu1 %vm1710_vm1, %v1709_v8 }
 0x29a   : > { %1564 = vmatprep.subr.bf16.mxu1 %v1709_v8 }
 0x29b   : > { %v836_v35 = vpop.permute.xlu1 %835 }
 0x29f   : > { %v948_v36 = vpop.permute.xlu1 %947 }
 0x2a0   : > { %v953_v37 = vsel %vm613_vm2, %v948_v36, 0  ;;  %1555 = vmatmul.mubr.msk.bf16.vlgmr.msra.gmra.mrb[4].mxu1 %vm613_vm2, %v836_v35 }
 0x2a1   : > { %1565 = vmatpush3.bf16.xpose.msra.mxu1 %v953_v37  ;;  %1566 = vmatprep.mubr.msk.bf16.mxu1 %vm1710_vm1, %v1709_v8 }
 0x2a2   : > { %1576 = vmatprep.subr.bf16.mxu1 %v1709_v8 }
 0x2a3   : > { %v946_v38 = vpop.permute.xlu1 %945 }
 0x2a8   : > { %1567 = vmatmul.mubr.msk.bf16.vlgmr.msra.gmra.mrb[8].mxu1 %vm613_vm2, %v946_v38 }
 0x2a9   : > { %1580 = vmatprep.mubr.msk.bf16.mxu1 %vm1710_vm1, %v1709_v8 }
 0x2f8   : > { %v654_v39 = vpop.f32.mrb[4].mxu0 }
 0x2f9   : > { %v1532_v40 = vpop.f32.mrb[5].mxu0  ;;  %v660_v41 = vsel %vm613_vm2, %v654_v39, -inf }
 0x2fa   : > { %661 = vmax.xlane.f32.xlu1 %v660_v41  ;;  %v657_v42 = vpop.f32.mrb[6].mxu0 }
 0x2fb   : > { %v1533_v43 = vpop.f32.mrb[7].mxu0 }
 0x36b   : > { %v769_v44 = vpop.f32.mrb[0].mxu1 }
 0x36c   : > { %v1544_v45 = vpop.f32.mrb[1].mxu1  ;;  %v775_v46 = vsel %vm613_vm2, %v769_v44, -inf }
 0x36d   : > { %776 = vmax.xlane.f32.xlu0 %v775_v46  ;;  %v772_v47 = vpop.f32.mrb[2].mxu1 }
 0x36e   : > { %v1545_v48 = vpop.f32.mrb[3].mxu1 }
 0x373   : > { %v879_v49 = vpop.f32.mrb[4].mxu1 }
 0x374   : > { %v1556_v50 = vpop.f32.mrb[5].mxu1  ;;  %v885_v51 = vsel %vm613_vm2, %v879_v49, -inf }
 0x375   : > { %886 = vmax.xlane.f32.xlu1 %v885_v51  ;;  %v882_v52 = vpop.f32.mrb[6].mxu1  ;;  %v1652_v50 = vld [vmem:[%s2012_s6 + $0x8] sm:$0xff]  }
 0x376   : > { %v1557_v53 = vpop.f32.mrb[7].mxu1 }
 0x37b   : > { %v989_v54 = vpop.f32.mrb[8].mxu1 }
 0x37c   : > { %v1568_v55 = vpop.f32.mrb[9].mxu1  ;;  %v995_v56 = vsel %vm613_vm2, %v989_v54, -inf }
 0x37d   : > { %996 = vmax.xlane.f32.xlu1 %v995_v56  ;;  %v992_v57 = vpop.f32.mrb[10].mxu1 }
 0x37e   : > { %v1569_v58 = vpop.f32.mrb[11].mxu1 }
 0x387   : > { %v662_v59 = vpop.xlane.xlu1 %661 }
 0x388   : > { %v663_v60 = vsub.f32 %v654_v39, %v662_v59 }
 0x38a   : > { %v664_v61 = vmul.f32 1.442695, %v663_v60 }
 0x38c   : > { %1665 = vpow2.f32 %v664_v61 }
 0x396   : > { %v1666_v62 = vpop.eup %1665 }
 0x397   : > { %v666_v63 = vsel %vm613_vm2, %v1666_v62, 0.0 }
 0x398   : > { %667 = vadd.xlane.f32.xlu0 %v666_v63 }
 0x3fa   : > { %v777_v1 = vpop.xlane.xlu0 %776 }
 0x3fb   : > { %v778_v2 = vsub.f32 %v769_v44, %v777_v1 }
 0x3fd   : > { %v779_v3 = vmul.f32 1.442695, %v778_v2 }
 0x3ff   : > { %1667 = vpow2.f32 %v779_v3  ;;  %v1465_v3 = vld [vmem:[%s2013_s7] ss:$0 sm:$0xff] }
 0x402   : > { %v887_v4 = vpop.xlane.xlu1 %886 }
 0x403   : > { %v888_v5 = vsub.f32 %v879_v49, %v887_v4  ;;  %v1651_v49 = vld [vmem:[%s2012_s6] sm:$0xff]  }
 0x404   : > { %1577 = vmatpush3.bf16.msra.mxu1 %v1651_v49 }
 0x405   : > { %v889_v6 = vmul.f32 1.442695, %v888_v5  ;;  %1578 = vmatprep.subr.bf16.mxu1 %v1709_v8 }
 0x407   : > { %1669 = vpow2.f32 %v889_v6 }
 0x408   : > { %1579 = vmatpush3.bf16.msra.mxu1 %v1652_v50 }
 0x409   : > { %v1668_v7 = vpop.eup %1667  ;;  %1592 = vmatprep.subr.bf16.mxu1 %v1709_v8 }
 0x40a   : > { %v781_v9 = vsel %vm613_vm2, %v1668_v7, 0.0  ;;  %v997_v13 = vpop.xlane.xlu1 %996 }
 0x40b   : > { %782 = vadd.xlane.f32.xlu1 %v781_v9  ;;  %v998_v14 = vsub.f32 %v989_v54, %v997_v13 }
 0x40d   : > { %v999_v15 = vmul.f32 1.442695, %v998_v14 }
 0x40f   : > { %1671 = vpow2.f32 %v999_v15 }
 0x411   : > { %v1670_v10 = vpop.eup %1669 }
 0x412   : > { %v891_v12 = vsel %vm613_vm2, %v1670_v10, 0.0 }
 0x413   : > { %892 = vadd.xlane.f32.xlu0 %v891_v12 }
 0x419   : > { %v1672_v16 = vpop.eup %1671 }
 0x41a   : > { %v1001_v17 = vsel %vm613_vm2, %v1672_v16, 0.0 }
 0x41c   : > { %787 = vrot.lane.b32.xlu1 %v1846_v11, %s1714_s27 }
 0x425   : > { %v668_v18 = vpop.xlane.xlu0 %667 }
 0x426   : > { %1673 = vrcp.f32 %v668_v18  ;;  %v1653_v18 = vld [vmem:[%s2016_s10] sm:$0xff]  }
 0x429   : > { %675 = vrot.lane.b32.xlu0 %v1846_v11, %s1715_s28 }
 0x42d   : > { %1007 = vrot.lane.b32.xlu0 %v1846_v11, %s1716_s18 }
 0x430   : > { %v1674_v20 = vpop.eup %1673 }
 0x431   : > { %v670_v22 = vmul.f32 %v1674_v20, %v1666_v62  ;;  %v1656_v20 = vld [vmem:[%s2018_s12 + $0x8] sm:$0xff]  }
 0x433   : > { %v671_v26 = vpack.c.bf16 %v670_v22, %v670_v22 }
 0x440   : > { %1002 = vadd.xlane.f32.xlu1 %v1001_v17 }
 0x451   : > { %897 = vrot.lane.b32.xlu1 %v1846_v11, %s1717_s19 }
 0x498   : > { %v783_v19 = vpop.xlane.xlu1 %782 }
 0x499   : > { %1675 = vrcp.f32 %v783_v19  ;;  %v1655_v19 = vld [vmem:[%s2018_s12] sm:$0xff]  }
 0x49c   : > { %v788_v25 = vpop.permute.xlu1 %787 }
 0x49d   : > { %v793_v28 = vsel %vm680_vm3, %v788_v25, 0 }
 0x4a0   : > { %v893_v21 = vpop.xlane.xlu0 %892 }
 0x4a1   : > { %1677 = vrcp.f32 %v893_v21  ;;  %v1657_v21 = vld [vmem:[%s2018_s12 + $0x10] sm:$0xff]  }
 0x4a3   : > { %v1676_v27 = vpop.eup %1675 }
 0x4a4   : > { %v676_v23 = vpop.permute.xlu0 %675  ;;  %v785_v11 = vmul.f32 %v1676_v27, %v1668_v7 }
 0x4a5   : > { %v682_v24 = vsel %vm680_vm3, %v676_v23, 0 }
 0x4a6   : > { %1535 = vmatpush3.bf16.msra.mxu0 %v682_v24  ;;  %v786_v29 = vpack.c.bf16 %v785_v11, %v785_v11 }
 0x4a7   : > { %1546 = vmatprep.subr.bf16.mxu0 %v1709_v8 }
 0x4a8   : > { %v1008_v34 = vpop.permute.xlu0 %1007 }
 0x4a9   : > { %1537 = vmatmul.mubr.msk.bf16.vlgmr.msra.gmra.mrb[8].mxu0 %vm613_vm2, %v671_v26  ;;  %v1013_v37 = vsel %vm680_vm3, %v1008_v34, 0  ;;  %v1469_v26 = vld [vmem:[%s2014_s8] ss:$0 sm:$0xff]  ;;  %v1661_v34 = vld [vmem:[%s2018_s12 + $0x30] sm:$0xff]  }
 0x4aa   : > { %1547 = vmatpush3.bf16.msra.mxu0 %v793_v28  ;;  %1548 = vmatprep.mubr.msk.bf16.mxu0 %vm1710_vm1, %v1709_v8  ;;  %v1470_v28 = vld [vmem:[%s2015_s9] ss:$0 sm:$0xff] }
 0x4ab   : > { %1558 = vmatprep.subr.bf16.mxu0 %v1709_v8  ;;  %v1678_v30 = vpop.eup %1677 }
 0x4ac   : > { %v895_v32 = vmul.f32 %v1678_v30, %v1670_v10 }
 0x4ae   : > { %v896_v36 = vpack.c.bf16 %v895_v32, %v895_v32  ;;  %v1659_v32 = vld [vmem:[%s2018_s12 + $0x20] sm:$0xff]  }
 0x4b1   : > { %1549 = vmatmul.mubr.msk.bf16.vlgmr.msra.gmra.mrb[12].mxu0 %vm613_vm2, %v786_v29 }
 0x4b2   : > { %1560 = vmatprep.mubr.msk.bf16.mxu0 %vm1710_vm1, %v1709_v8 }
 0x4cd   : > { %v1003_v31 = vpop.xlane.xlu1 %1002 }
 0x4ce   : > { %1679 = vrcp.f32 %v1003_v31  ;;  %v1658_v31 = vld [vmem:[%s2018_s12 + $0x18] sm:$0xff]  }
 0x4d1   : > { %v898_v33 = vpop.permute.xlu1 %897 }
 0x4d2   : > { %v903_v35 = vsel %vm680_vm3, %v898_v33, 0  ;;  %v1660_v33 = vld [vmem:[%s2018_s12 + $0x28] sm:$0xff]  }
 0x4d3   : > { %1559 = vmatpush3.bf16.msra.mxu0 %v903_v35  ;;  %v1662_v35 = vld [vmem:[%s2018_s12 + $0x38] sm:$0xff]  }
 0x4d4   : > { %1570 = vmatprep.subr.bf16.mxu0 %v1709_v8 }
 0x4d6   : > { %1561 = vmatmul.mubr.msk.bf16.vlgmr.msra.gmra.mrb[16].mxu0 %vm613_vm2, %v896_v36  ;;  %v1471_v36 = vld [vmem:[%s2017_s11] ss:$0 sm:$0xff] }
 0x4d7   : > { %1571 = vmatpush3.bf16.msra.mxu0 %v1013_v37  ;;  %1572 = vmatprep.mubr.msk.bf16.mxu0 %vm1710_vm1, %v1709_v8 }
 0x4d8   : > { %v1680_v38 = vpop.eup %1679  ;;  %1584 = vmatprep.subr.bf16.mxu0 %v1709_v8 }
 0x4d9   : > { %v1005_v39 = vmul.f32 %v1680_v38, %v1672_v16 }
 0x4db   : > { %v1006_v40 = vpack.c.bf16 %v1005_v39, %v1005_v39 }
 0x4de   : > { %1573 = vmatmul.mubr.msk.bf16.vlgmr.msra.gmra.mrb[20].mxu0 %vm613_vm2, %v1006_v40 }
 0x4df   : > { %1588 = vmatprep.mubr.msk.bf16.mxu0 %vm1710_vm1, %v1709_v8  ;;  %1585 = vmatpush3.bf16.msra.mxu0 %v1653_v18 }
 0x4e0   : > { %1586 = vmatprep.subr.bf16.mxu0 %v1709_v8 }
 0x57c   : > { %v718_v41 = vpop.f32.mrb[8].mxu0 }
 0x57d   : > { %v1538_v42 = vpop.f32.mrb[9].mxu0 }
 0x57e   : > { %v721_v43 = vpop.f32.mrb[10].mxu0 }
 0x57f   : > { %v1539_v44 = vpop.f32.mrb[11].mxu0 }
 0x584   : > { %v829_v45 = vpop.f32.mrb[12].mxu0 }
 0x585   : > { %1056 = vrot.lane.b32.xlu1 %v829_v45, %s1718_s20  ;;  %v1550_v46 = vpop.f32.mrb[13].mxu0 }
 0x586   : > { %v832_v47 = vpop.f32.mrb[14].mxu0 }
 0x587   : > { %v1551_v48 = vpop.f32.mrb[15].mxu0 }
 0x588   : > { %v1483_v48 = vld [vmem:[%s2019_s13] ss:$0 sm:$0xff] }
 0x5a9   : > { %v939_v51 = vpop.f32.mrb[16].mxu0 }
 0x5aa   : > { %1060 = vrot.lane.b32.xlu0 %v939_v51, %s1719_s25  ;;  %v1562_v52 = vpop.f32.mrb[17].mxu0 }
 0x5ab   : > { %v942_v53 = vpop.f32.mrb[18].mxu0 }
 0x5ac   : > { %v1563_v54 = vpop.f32.mrb[19].mxu0 }
 0x5b1   : > { %v1049_v55 = vpop.f32.mrb[20].mxu0 }
 0x5b2   : > { %1064 = vrot.lane.b32.xlu1 %v1049_v55, %s1720_s26  ;;  %v1574_v56 = vpop.f32.mrb[21].mxu0  ;;  %s510_s26 = scalar_lea.vmem %s2020_s14, %s1447_s17 }
 0x5b3   : > { %v1052_v57 = vpop.f32.mrb[22].mxu0 }
 0x5b4   : > { %v1575_v58 = vpop.f32.mrb[23].mxu0 }
 0x5f7   : > { %v1057_v59 = vpop.permute.xlu1 %1056 }
 0x5f8   : > { %v1067_v61 = vsel %vm613_vm2, %v718_v41, %v1057_v59 }
 0x61c   : > { %v1061_v60 = vpop.permute.xlu0 %1060 }
 0x61d   : > { %v1069_v62 = vsel %vm1068_vm4, %v1067_v61, %v1061_v60 }
 0x624   : > { %v1065_v63 = vpop.permute.xlu1 %1064 }
 0x625   : > { %v1071_v1 = vsel %vm1070_vm5, %v1069_v62, %v1065_v63 }
 0x626   : > { %v1072_v2 = vpack.c.bf16 %v1071_v1, %v1071_v1 }
 0x628   : > { %1581 = vmatmul.mubr.msk.bf16.vlgmr.msra.gmra.mrb[12].mxu1 %vm515_vm0, %v1072_v2 }
 0x629   : > { %1608 = vmatprep.mubr.msk.bf16.mxu1 %vm1710_vm1, %v1709_v8  ;;  %1593 = vmatpush3.bf16.msra.mxu1 %v1655_v19 }
 0x62a   : > { %1594 = vmatprep.subr.bf16.mxu1 %v1709_v8 }
 0x62d   : > { %1595 = vmatpush3.bf16.msra.mxu1 %v1656_v20 }
 0x62e   : > { %1596 = vmatprep.subr.bf16.mxu1 %v1709_v8 }
 0x631   : > { %1597 = vmatpush3.bf16.msra.mxu1 %v1657_v21 }
 0x632   : > { %1598 = vmatprep.subr.bf16.mxu1 %v1709_v8 }
 0x635   : > { %1599 = vmatpush3.bf16.msra.mxu1 %v1658_v31 }
 0x636   : > { %1600 = vmatprep.subr.bf16.mxu1 %v1709_v8 }
 0x639   : > { %1601 = vmatpush3.bf16.msra.mxu1 %v1659_v32 }
 0x63a   : > { %1602 = vmatprep.subr.bf16.mxu1 %v1709_v8 }
 0x63d   : > { %1603 = vmatpush3.bf16.msra.mxu1 %v1660_v33 }
 0x63e   : > { %1604 = vmatprep.subr.bf16.mxu1 %v1709_v8 }
 0x641   : > { %1605 = vmatpush3.bf16.msra.mxu1 %v1661_v34 }
 0x642   : > { %1606 = vmatprep.subr.bf16.mxu1 %v1709_v8 }
 0x645   : > { %1607 = vmatpush3.bf16.msra.mxu1 %v1662_v35 }
 0x6fb   : > { %v1133_v4 = vpop.f32.mrb[12].mxu1 }
 0x6fc   : > { %v1134_v5 = vadd.f32 %v1465_v3, %v1133_v4  ;;  %v1582_v6 = vpop.f32.mrb[13].mxu1 }
 0x6fd   : > { %v1136_v7 = vpop.f32.mrb[14].mxu1 }
 0x6fe   : > { %v1933_v9 = vadd.f32 %v1134_v5, %v1822_v0  ;;  %v1583_v10 = vpop.f32.mrb[15].mxu1  ;;  %v1654_v0 = vld [vmem:[%s2016_s10 + $0x8] sm:$0xff]  }
 0x6ff   : > { %1587 = vmatpush3.bf16.msra.mxu0 %v1654_v0 }
 0x700   : > { %v1142_v12 = vsel %vm515_vm0, %v1933_v9, 0.0 }
 0x701   : > { %1143 = vadd.xlane.f32.xlu0 %v1142_v12 }
 0x78e   : > { %v1144_v13 = vpop.xlane.xlu0 %1143 }
 0x78f   : > { %v1145_v14 = vmul.f32 0.03125, %v1144_v13 }
 0x791   : > { %v1146_v15 = vsub.f32 %v1933_v9, %v1145_v14 }
 0x793   : > { %v1147_v16 = vmul.f32 %v1146_v15, %v1146_v15 }
 0x795   : > { %v1148_v17 = vsel %vm515_vm0, %v1147_v16, 0.0 }
 0x796   : > { %1149 = vadd.xlane.f32.xlu1 %v1148_v17 }
 0x823   : > { %v1150_v22 = vpop.xlane.xlu1 %1149 }
 0x824   : > { %v1151_v23 = vmul.f32 0.03125, %v1150_v22 }
 0x826   : > { %v1152_v24 = vadd.f32 1e-05, %v1151_v23 }
 0x828   : > { %1681 = vrsqrt.f32 %v1152_v24 }
 0x832   : > { %v1682_v25 = vpop.eup %1681 }
 0x833   : > { %v1154_v27 = vmul.f32 %v1682_v25, %v1146_v15 }
 0x835   : > { %v1161_v11 = vmul.f32 %v1469_v26, %v1154_v27 }
 0x837   : > { %v1168_v29 = vadd.f32 %v1470_v28, %v1161_v11 }
 0x839   : > { %v1169_v30 = vpack.c.bf16 %v1168_v29, %v1168_v29 }
 0x83b   : > { %1589 = vmatmul.mubr.msk.bf16.vlgmr.msra.gmra.mrb[24].mxu0 %vm515_vm0, %v1169_v30 }
 0x90e   : > { %v1230_v37 = vpop.f32.mrb[24].mxu0 }
 0x90f   : > { %v1231_v38 = vadd.f32 %v1471_v36, %v1230_v37  ;;  %v1590_v39 = vpop.f32.mrb[25].mxu0 }
 0x910   : > { %v1233_v40 = vpop.f32.mrb[26].mxu0 }
 0x911   : > { %v1237_v41 = vmul.f32 0.70710677, %v1231_v38  ;;  %v1591_v42 = vpop.f32.mrb[27].mxu0  ;;  %v1236_v44 = vmul.f32 0.5, %v1231_v38 }
 0x913   : > { %1683 = verf.f32 %v1237_v41 }
 0x91d   : > { %v1684_v43 = vpop.eup %1683 }
 0x91e   : > { %v1239_v8 = vadd.f32 1.0, %v1684_v43 }
 0x920   : > { %v1240_v45 = vmul.f32 %v1239_v8, %v1236_v44 }
 0x922   : > { %v1241_v46 = vpack.c.bf16 %v1240_v45, %v1240_v45 }
 0x924   : > { %1609 = vmatmul.mubr.bf16.vlgmr.msra.gmra.mrb[16].mxu1 %v1241_v46 }
 0x9f7   : > { %v1340_v47 = vpop.f32.mrb[16].mxu1 }
 0x9f8   : > { %v1346_v49 = vadd.f32 %v1340_v47, %v1933_v9  ;;  %v1610_v50 = vpop.f32.mrb[17].mxu1 }
 0x9f9   : > { %v1343_v51 = vpop.f32.mrb[18].mxu1 }
 0x9fa   : > { %v1354_v52 = vadd.f32 %v1483_v48, %v1346_v49  ;;  %v1611_v53 = vpop.f32.mrb[19].mxu1 }
 0x9fc   : > { %1355 = vst.msk [vmem:[%s510_s26] sm:$0xff] %vm515_vm0, %v1354_v52 }
 0x9fd PF: > { %s24_s15 = sadd.s32 1, %s1707_s15   ;;  %s2021_s29 = smov %s1703_s30 }
 0x9fe   : > { %p21_p5 = scmp.ge.s32.totalorder %s24_s15, 4   ;;  %s2022_s30 = smov %s2024_s16 }
 0xa00   :  { %23 = sbr.rel (!%p21_p5) target bundleno = 2 (0x2), region = 109 }

</bundles_post_ra>
